<compile_context>
chip_gen: v6e
topology: v6e:2x2x1
jax: 0.10.0
libtpu: 0.0.40
codegen_flags: <defaults>
</compile_context>

<pallas_src>
import functools

import jax
import jax.numpy as jnp
from jax.experimental import pallas as pl
from jax.experimental.pallas import tpu as pltpu


_NO_MASK, _BOOL_MASK, _FLOAT_MASK = 0, 1, 2


def _attn_kernel(*refs, H, D, scale, mask_mode, packed):
    """One (batch, q-tile, k-tile) grid step.

    Block shapes seen here:
      q_ref : (1, H, tq, D)      native dtype (resident across ki)
      k_ref : (1, H, tk, D)      native dtype
      v_ref : (1, H, tk, D)      native dtype
      m_ref : (1, bh, bq, bk)    bool / float (optional; broadcast dims are 1)
      o_ref : (1, tq, H*D) f32   if packed (D < 128)  — lane-dense accumulator
              (1, H, tq, D) f32  otherwise            — direct layout
      qs_ref: (H, tq, D)         native-dtype scratch holding Q * 1/sqrt(key_dim)
    """
    if mask_mode == _NO_MASK:
        q_ref, k_ref, v_ref, o_ref, qs_ref = refs
        m_ref = None
    else:
        q_ref, k_ref, v_ref, m_ref, o_ref, qs_ref = refs

    ki = pl.program_id(2)

    @pl.when(ki == 0)
    def _init():
        # Output block index is constant across ki -> resident; accumulate
        # directly into it (no separate acc scratch, no final copy).
        o_ref[...] = jnp.zeros_like(o_ref)
        # Fold 1/sqrt(key_dim) into Q once per q-tile (Q block is resident
        # across the whole Sk axis). Weak-typed python float keeps the dtype.
        qs_ref[...] = q_ref[0] * scale

    q = qs_ref[...]                                    # (H, tq, D), pre-scaled
    k = k_ref[0]                                       # (H, tk, D)
    v = v_ref[0]                                       # (H, tk, D)

    # scores: (H, tq, tk), f32 accumulation on the MXU.
    scores = jnp.einsum("hqd,hkd->hqk", q, k,
                        preferred_element_type=jnp.float32)

    if mask_mode == _BOOL_MASK:
        # Boolean 0/1 mask: one VPU select, broadcast over size-1 dims in-kernel.
        scores = jnp.where(m_ref[0], scores - 1.0e9, scores)
    elif mask_mode == _FLOAT_MASK:
        # Exact additive semantics of the module for float/int masks.
        scores = scores + (-1.0e9) * m_ref[0].astype(jnp.float32)

    # Softmax across the HEADS axis (PyTorch implicit-dim softmax on 4-D -> dim=1).
    # Every (q, k) column normalizes independently, so the Sk grid axis is a
    # plain sum reduction with no online-softmax carry state.
    m = jnp.max(scores, axis=0, keepdims=True)               # (1, tq, tk)
    e = jnp.exp(scores - m)                                   # (H, tq, tk) f32
    denom = jnp.sum(e, axis=0, keepdims=True)                 # (1, tq, tk)
    # Exact reciprocal (EUP has slack next to exp; tightens numerics).
    w = (e * pl.reciprocal(denom)).astype(v.dtype)            # bf16 when V is bf16

    if packed:
        # One lane-dense (tq, H*D) accumulate instead of H masked D-lane RMWs.
        pv = jnp.concatenate(
            [jnp.dot(w[h], v[h], preferred_element_type=jnp.float32)
             for h in range(H)],
            axis=-1)                                          # (tq, H*D) f32
        o_ref[0] += pv
    else:
        o_ref[0] += jnp.einsum("hqk,hkd->hqd", w, v,
                               preferred_element_type=jnp.float32)


def _pick_tile(dim, target):
    """Largest multiple of 128 that divides `dim` and is <= target, else full dim."""
    if dim <= target:
        return dim
    t = (target // 128) * 128
    while t >= 128:
        if dim % t == 0:
            return t
        t -= 128
    return dim


def _vmem_capacity_bytes():
    try:
        return int(pltpu.get_tpu_info().vmem_capacity_bytes)
    except Exception:
        return 64 * 1024 * 1024  # conservative (v7x-sized) default


def dot_product_attention(queries, keys, values, key_dim, mask=None,
                          packed_output=False):
    """Pallas TPU implementation of DotProductAttention.forward.

    queries: (B, H, Sq, D); keys/values: (B, H, Sk, D);
    mask (optional): broadcastable to (B, H, Sq, Sk) (size-1 dims allowed and
    kept out of HBM traffic).
    Returns (B, H, Sq, D) float32, or (B, Sq, H*D) float32 if packed_output.
    """
    B, H, Sq, D = queries.shape
    Sk = keys.shape[2]
    HD = H * D
    scale = float(key_dim) ** -0.5

    # ---- mask normalization (no HBM broadcast) ---------------------------
    mask_mode = _NO_MASK
    mask_arr = None
    if mask is not None:
        mask_arr = jnp.asarray(mask)
        if mask_arr.ndim < 4:
            mask_arr = mask_arr.reshape((1,) * (4 - mask_arr.ndim) + mask_arr.shape)
        mb, mh, mq, mk = mask_arr.shape
        if (mb not in (1, B) or mh not in (1, H)
                or mq not in (1, Sq) or mk not in (1, Sk)):
            raise ValueError(f"mask shape {mask_arr.shape} is not broadcastable "
                             f"to {(B, H, Sq, Sk)}")
        if mask_arr.dtype == jnp.bool_:
            mask_mode = _BOOL_MASK
        else:
            mask_mode = _FLOAT_MASK
            if not jnp.issubdtype(mask_arr.dtype, jnp.floating):
                # Integer masks keep the exact additive (-1e9 * value) semantics.
                mask_arr = mask_arr.astype(jnp.float32)

    # ---- per-generation tile sizing with a full VMEM budget --------------
    vmem = _vmem_capacity_bytes()
    small_vmem = vmem < (100 << 20)            # v7x: 64 MiB/TC; v5e/v6e: 128 MiB
    tq_target = 256                            # fills the 256-wide MXU M dim
    tk_target = 256 if small_vmem else 512
    vmem_limit = (48 << 20) if small_vmem else (96 << 20)
    vmem_cap = int(vmem_limit * 0.8)

    in_bytes = queries.dtype.itemsize

    def _budget(tq, tk):
        b = 2 * (H * tq * D + 2 * H * tk * D) * in_bytes        # dbl-buffered Q,K,V
        b += 2 * tq * HD * 4                                    # dbl-buffered output block
        b += H * tq * tk * (2 * 4 + in_bytes) + 2 * tq * tk * 4  # scores+e f32, w, max/denom
        b += H * tq * D * in_bytes                               # scaled-Q scratch
        if mask_arr is not None:
            _, mh, mq, mk = mask_arr.shape
            b += 2 * (H if mh == H else 1) * (tq if mq == Sq else 1) \
                   * (tk if mk == Sk else 1) * mask_arr.dtype.itemsize
        return b

    tq = _pick_tile(Sq, tq_target)
    tk = _pick_tile(Sk, tk_target)
    while _budget(tq, tk) > vmem_cap and max(tq, tk) > 128:
        if tk >= tq and tk > 128:
            nt = _pick_tile(Sk, max(tk // 2, 128))
            if nt < tk:
                tk = nt
                continue
        if tq > 128:
            nt = _pick_tile(Sq, max(tq // 2, 128))
            if nt < tq:
                tq = nt
                continue
        break

    grid = (B, Sq // tq, Sk // tk)

    # ---- specs -----------------------------------------------------------
    inputs = [queries, keys, values]             # native dtypes, no upcast pass
    in_specs = [
        pl.BlockSpec((1, H, tq, D), lambda b, qi, ki: (b, 0, qi, 0)),
        pl.BlockSpec((1, H, tk, D), lambda b, qi, ki: (b, 0, ki, 0)),
        pl.BlockSpec((1, H, tk, D), lambda b, qi, ki: (b, 0, ki, 0)),
    ]

    if mask_arr is not None:
        mb, mh, mq, mk = mask_arr.shape
        bh = H if mh == H else 1
        bq = tq if mq == Sq else 1
        bk = tk if mk == Sk else 1

        def mask_index(b, qi, ki):
            return (b if mb == B else 0,
                    0,
                    qi if mq == Sq else 0,
                    ki if mk == Sk else 0)

        inputs.append(mask_arr)
        in_specs.append(pl.BlockSpec((1, bh, bq, bk), mask_index))

    packed = D < 128
    if packed:
        # Lane-dense output slab (B, Sq, H*D).
        out_shape = jax.ShapeDtypeStruct((B, Sq, HD), jnp.float32)
        out_spec = pl.BlockSpec((1, tq, HD), lambda b, qi, ki: (b, qi, 0))
    else:
        # D already lane-dense: write (B, H, Sq, D) directly, no wrapper transpose.
        out_shape = jax.ShapeDtypeStruct((B, H, Sq, D), jnp.float32)
        out_spec = pl.BlockSpec((1, H, tq, D), lambda b, qi, ki: (b, 0, qi, 0))

    kernel = functools.partial(_attn_kernel, H=H, D=D, scale=scale,
                               mask_mode=mask_mode, packed=packed)

    bytes_accessed = (sum(int(x.size) * x.dtype.itemsize for x in inputs)
                      + B * Sq * HD * 4)
    cost = pl.CostEstimate(flops=4 * B * H * Sq * Sk * D,
                           transcendentals=B * H * Sq * Sk,
                           bytes_accessed=int(bytes_accessed))

    out = pl.pallas_call(
        kernel,
        out_shape=out_shape,
        grid_spec=pltpu.PrefetchScalarGridSpec(
            num_scalar_prefetch=0,
            grid=grid,
            in_specs=in_specs,
            out_specs=out_spec,
            scratch_shapes=[pltpu.VMEM((H, tq, D), queries.dtype)],
        ),
        compiler_params=pltpu.CompilerParams(
            dimension_semantics=("parallel", "parallel", "arbitrary"),
            vmem_limit_bytes=vmem_limit,
        ),
        cost_estimate=cost,
    )(*inputs)

    if packed:
        if packed_output:
            return out                                       # (B, Sq, H*D)
        # Layout plumbing back to the module's (B, H, Sq, D) contract.
        return out.reshape(B, Sq, H, D).transpose(0, 2, 1, 3)
    if packed_output:
        return out.transpose(0, 2, 1, 3).reshape(B, Sq, HD)
    return out


def _reference(queries, keys, values, key_dim, mask=None):
    """Plain-JAX reference mirroring the PyTorch module (float32)."""
    q = queries.astype(jnp.float32)
    k = keys.astype(jnp.float32)
    v = values.astype(jnp.float32)
    scores = jnp.einsum("bhqd,bhkd->bhqk", q, k) / jnp.sqrt(jnp.float32(key_dim))
    if mask is not None:
        scores = scores + (-1.0e9) * jnp.asarray(mask).astype(jnp.float32)
    weights = jax.nn.softmax(scores, axis=1)  # PyTorch implicit dim=1 on 4-D input
    return jnp.einsum("bhqk,bhkd->bhqd", weights, v)


if __name__ == "__main__":
    # Small shapes: batch=2, heads=4, seq=8, head_dim=32.
    B, H, S, D = 2, 4, 8, 32
    key_dim = D

    key = jax.random.PRNGKey(0)
    kq, kk, kv, km1, km2, kd = jax.random.split(key, 6)
    q32 = jax.random.normal(kq, (B, H, S, D), dtype=jnp.float32)
    k32 = jax.random.normal(kk, (B, H, S, D), dtype=jnp.float32)
    v32 = jax.random.normal(kv, (B, H, S, D), dtype=jnp.float32)

    # 1) float32, no mask
    out = jax.block_until_ready(dot_product_attention(q32, k32, v32, key_dim))
    ref = _reference(q32, k32, v32, key_dim)
    assert out.shape == (B, H, S, D)
    assert jnp.allclose(out, ref, atol=3e-3, rtol=3e-3), "f32 no-mask mismatch"

    # 2) float32, 0/1 float mask at its natural broadcast shape (B, 1, Sq, Sk):
    #    the head-broadcast dim never hits HBM.
    maskf = jax.random.bernoulli(km1, p=0.3, shape=(B, 1, S, S)).astype(jnp.float32)
    out_m = jax.block_until_ready(
        dot_product_attention(q32, k32, v32, key_dim, mask=maskf))
    ref_m = _reference(q32, k32, v32, key_dim, mask=maskf)
    assert jnp.allclose(out_m, ref_m, atol=3e-3, rtol=3e-3), "f32 float-mask mismatch"

    # 3) float32, boolean mask (full shape) -> in-kernel select path
    maskb = jax.random.bernoulli(km2, p=0.3, shape=(B, H, S, S))
    out_b = jax.block_until_ready(
        dot_product_attention(q32, k32, v32, key_dim, mask=maskb))
    ref_b = _reference(q32, k32, v32, key_dim, mask=maskb)
    assert jnp.allclose(out_b, ref_b, atol=3e-3, rtol=3e-3), "f32 bool-mask mismatch"

    # 4) bfloat16 inputs stay bf16 on the wire (bf16 MXU path, f32 accumulation)
    qb, kb, vb = (x.astype(jnp.bfloat16) for x in (q32, k32, v32))
    out_bf = jax.block_until_ready(dot_product_attention(qb, kb, vb, key_dim))
    ref_bf = _reference(qb, kb, vb, key_dim)
    assert jnp.allclose(out_bf, ref_bf, atol=1e-1, rtol=1e-1), "bf16 mismatch"

    # 5) D >= 128 -> direct (B, H, Sq, D) output path (no packing, no transpose)
    B2, H2, D2 = 1, 2, 128
    qd = jax.random.normal(kd, (B2, H2, S, D2), dtype=jnp.float32)
    out_d = jax.block_until_ready(dot_product_attention(qd, qd, qd, D2))
    ref_d = _reference(qd, qd, qd, D2)
    assert out_d.shape == (B2, H2, S, D2)
    assert jnp.allclose(out_d, ref_d, atol=3e-3, rtol=3e-3), "D>=128 path mismatch"

    print("KERNEL_OK")
</pallas_src>

<mosaic_0001>
module attributes {stable_mosaic.version = 11 : i64} {
  func.func @_attn_kernel(%arg0: i32, %arg1: i32, %arg2: i32, %arg3: memref<1x4x8x32xf32, #tpu.memory_space<vmem>>, %arg4: memref<1x4x8x32xf32, #tpu.memory_space<vmem>>, %arg5: memref<1x4x8x32xf32, #tpu.memory_space<vmem>>, %arg6: memref<1x8x128xf32, #tpu.memory_space<vmem>>, %arg7: memref<4x8x32xf32, #tpu.memory_space<vmem>>) attributes {dimension_semantics = [#tpu.dimension_semantics<parallel>, #tpu.dimension_semantics<parallel>, #tpu.dimension_semantics<arbitrary>], iteration_bounds = array<i64: 2, 1, 1>, scalar_prefetch = 0 : i64, scratch_operands = 1 : i64, tpu.core_type = #tpu.core_type<tc>, window_params = [{transform_indices = @transform_0, window_bounds = array<i64: 1, 4, 8, 32>}, {transform_indices = @transform_1, window_bounds = array<i64: 1, 4, 8, 32>}, {transform_indices = @transform_2, window_bounds = array<i64: 1, 4, 8, 32>}, {transform_indices = @transform_3, window_bounds = array<i64: 1, 8, 128>}]} {
    %c0_i32 = arith.constant 0 : i32
    %0 = arith.cmpi eq, %arg2, %c0_i32 : i32
    %1 = arith.extui %0 : i1 to i32
    %c0_i32_0 = arith.constant 0 : i32
    %2 = arith.cmpi ne, %1, %c0_i32_0 : i32
    scf.if %2 {
      %cst_23 = arith.constant 0.000000e+00 : f32
      %46 = vector.broadcast %cst_23 : f32 to vector<1x8x128xf32>
      %c0_24 = arith.constant 0 : index
      %c0_25 = arith.constant 0 : index
      %c0_26 = arith.constant 0 : index
      %47 = vector.load %arg6[%c0_24, %c0_25, %c0_26] : memref<1x8x128xf32, #tpu.memory_space<vmem>>, vector<1x8x128xf32>
      tpu.vector_store %arg6[%c0_24, %c0_25, %c0_26], %46 {strides = array<i32>} : memref<1x8x128xf32, #tpu.memory_space<vmem>>, vector<1x8x128xf32>,
      %c0_27 = arith.constant 0 : index
      %c0_28 = arith.constant 0 : index
      %c0_29 = arith.constant 0 : index
      %c0_30 = arith.constant 0 : index
      %48 = vector.load %arg3[%c0_27, %c0_28, %c0_29, %c0_30] : memref<1x4x8x32xf32, #tpu.memory_space<vmem>>, vector<1x4x8x32xf32>
      %49 = vector.shape_cast %48 : vector<1x4x8x32xf32> to vector<4x8x32xf32>
      %cst_31 = arith.constant 0.176776692 : f32
      %50 = vector.broadcast %cst_31 : f32 to vector<4x8x32xf32>
      %51 = arith.mulf %49, %50 : vector<4x8x32xf32>
      %c0_32 = arith.constant 0 : index
      %c0_33 = arith.constant 0 : index
      %c0_34 = arith.constant 0 : index
      %52 = vector.load %arg7[%c0_32, %c0_33, %c0_34] : memref<4x8x32xf32, #tpu.memory_space<vmem>>, vector<4x8x32xf32>
      tpu.vector_store %arg7[%c0_32, %c0_33, %c0_34], %51 {strides = array<i32>} : memref<4x8x32xf32, #tpu.memory_space<vmem>>, vector<4x8x32xf32>,
    } else {
    }
    %c0 = arith.constant 0 : index
    %c0_1 = arith.constant 0 : index
    %c0_2 = arith.constant 0 : index
    %3 = vector.load %arg7[%c0, %c0_1, %c0_2] : memref<4x8x32xf32, #tpu.memory_space<vmem>>, vector<4x8x32xf32>
    %c0_3 = arith.constant 0 : index
    %c0_4 = arith.constant 0 : index
    %c0_5 = arith.constant 0 : index
    %c0_6 = arith.constant 0 : index
    %4 = vector.load %arg4[%c0_3, %c0_4, %c0_5, %c0_6] : memref<1x4x8x32xf32, #tpu.memory_space<vmem>>, vector<1x4x8x32xf32>
    %5 = vector.shape_cast %4 : vector<1x4x8x32xf32> to vector<4x8x32xf32>
    %c0_7 = arith.constant 0 : index
    %c0_8 = arith.constant 0 : index
    %c0_9 = arith.constant 0 : index
    %c0_10 = arith.constant 0 : index
    %6 = vector.load %arg5[%c0_7, %c0_8, %c0_9, %c0_10] : memref<1x4x8x32xf32, #tpu.memory_space<vmem>>, vector<1x4x8x32xf32>
    %7 = vector.shape_cast %6 : vector<1x4x8x32xf32> to vector<4x8x32xf32>
    "tpu.trace_start"() <{level = 10 : i32, message = "hqd,hkd->hqk"}> : () -> ()
    %cst = arith.constant dense<0.000000e+00> : vector<4x8x8xf32>
    %8 = tpu.matmul %3, %5, %cst {dimension_numbers = #tpu.dot_dimension_numbers<[2], [2], [1], [1], [0, 0, 0, 1, 1, 1], [0], [0]>} : vector<4x8x32xf32>, vector<4x8x32xf32>, vector<4x8x8xf32> -> vector<4x8x8xf32>
    "tpu.trace_stop"() : () -> ()
    %cst_11 = arith.constant dense<0xFF800000> : vector<8x8xf32>
    %9 = vector.multi_reduction <maximumf>, %8, %cst_11 [0] : vector<4x8x8xf32> to vector<8x8xf32>
    %10 = vector.shape_cast %9 : vector<8x8xf32> to vector<1x8x8xf32>
    %11 = vector.broadcast %10 : vector<1x8x8xf32> to vector<4x8x8xf32>
    %12 = arith.subf %8, %11 : vector<4x8x8xf32>
    %13 = math.exp %12 : vector<4x8x8xf32>
    %cst_12 = arith.constant dense<0.000000e+00> : vector<8x8xf32>
    %14 = vector.multi_reduction <add>, %13, %cst_12 [0] : vector<4x8x8xf32> to vector<8x8xf32>
    %15 = vector.shape_cast %14 : vector<8x8xf32> to vector<1x8x8xf32>
    %16 = tpu.reciprocal %15 : vector<1x8x8xf32> -> vector<1x8x8xf32>
    %17 = vector.broadcast %16 : vector<1x8x8xf32> to vector<4x8x8xf32>
    %18 = arith.mulf %13, %17 : vector<4x8x8xf32>
    %19 = vector.extract_strided_slice %18 {offsets = [0, 0, 0], sizes = [1, 8, 8], strides = [1, 1, 1]} : vector<4x8x8xf32> to vector<1x8x8xf32>
    %20 = vector.shape_cast %19 : vector<1x8x8xf32> to vector<8x8xf32>
    %21 = vector.extract_strided_slice %7 {offsets = [0, 0, 0], sizes = [1, 8, 32], strides = [1, 1, 1]} : vector<4x8x32xf32> to vector<1x8x32xf32>
    %22 = vector.shape_cast %21 : vector<1x8x32xf32> to vector<8x32xf32>
    %cst_13 = arith.constant dense<0.000000e+00> : vector<8x32xf32>
    %23 = tpu.matmul %20, %22, %cst_13 {dimension_numbers = #tpu.dot_dimension_numbers<[1], [0], [0], [1], [0, 0, 1, 1], [], []>} : vector<8x8xf32>, vector<8x32xf32>, vector<8x32xf32> -> vector<8x32xf32>
    %24 = vector.extract_strided_slice %18 {offsets = [1, 0, 0], sizes = [1, 8, 8], strides = [1, 1, 1]} : vector<4x8x8xf32> to vector<1x8x8xf32>
    %25 = vector.shape_cast %24 : vector<1x8x8xf32> to vector<8x8xf32>
    %26 = vector.extract_strided_slice %7 {offsets = [1, 0, 0], sizes = [1, 8, 32], strides = [1, 1, 1]} : vector<4x8x32xf32> to vector<1x8x32xf32>
    %27 = vector.shape_cast %26 : vector<1x8x32xf32> to vector<8x32xf32>
    %cst_14 = arith.constant dense<0.000000e+00> : vector<8x32xf32>
    %28 = tpu.matmul %25, %27, %cst_14 {dimension_numbers = #tpu.dot_dimension_numbers<[1], [0], [0], [1], [0, 0, 1, 1], [], []>} : vector<8x8xf32>, vector<8x32xf32>, vector<8x32xf32> -> vector<8x32xf32>
    %29 = vector.extract_strided_slice %18 {offsets = [2, 0, 0], sizes = [1, 8, 8], strides = [1, 1, 1]} : vector<4x8x8xf32> to vector<1x8x8xf32>
    %30 = vector.shape_cast %29 : vector<1x8x8xf32> to vector<8x8xf32>
    %31 = vector.extract_strided_slice %7 {offsets = [2, 0, 0], sizes = [1, 8, 32], strides = [1, 1, 1]} : vector<4x8x32xf32> to vector<1x8x32xf32>
    %32 = vector.shape_cast %31 : vector<1x8x32xf32> to vector<8x32xf32>
    %cst_15 = arith.constant dense<0.000000e+00> : vector<8x32xf32>
    %33 = tpu.matmul %30, %32, %cst_15 {dimension_numbers = #tpu.dot_dimension_numbers<[1], [0], [0], [1], [0, 0, 1, 1], [], []>} : vector<8x8xf32>, vector<8x32xf32>, vector<8x32xf32> -> vector<8x32xf32>
    %34 = vector.extract_strided_slice %18 {offsets = [3, 0, 0], sizes = [1, 8, 8], strides = [1, 1, 1]} : vector<4x8x8xf32> to vector<1x8x8xf32>
    %35 = vector.shape_cast %34 : vector<1x8x8xf32> to vector<8x8xf32>
    %36 = vector.extract_strided_slice %7 {offsets = [3, 0, 0], sizes = [1, 8, 32], strides = [1, 1, 1]} : vector<4x8x32xf32> to vector<1x8x32xf32>
    %37 = vector.shape_cast %36 : vector<1x8x32xf32> to vector<8x32xf32>
    %cst_16 = arith.constant dense<0.000000e+00> : vector<8x32xf32>
    %38 = tpu.matmul %35, %37, %cst_16 {dimension_numbers = #tpu.dot_dimension_numbers<[1], [0], [0], [1], [0, 0, 1, 1], [], []>} : vector<8x8xf32>, vector<8x32xf32>, vector<8x32xf32> -> vector<8x32xf32>
    %39 = tpu.concatenate %23, %28, %33, %38 in 1 : vector<8x32xf32>, vector<8x32xf32>, vector<8x32xf32>, vector<8x32xf32> -> vector<8x128xf32>
    %c0_17 = arith.constant 0 : index
    %c0_18 = arith.constant 0 : index
    %c0_19 = arith.constant 0 : index
    %40 = vector.load %arg6[%c0_17, %c0_18, %c0_19] : memref<1x8x128xf32, #tpu.memory_space<vmem>>, vector<1x8x128xf32>
    %41 = vector.shape_cast %40 : vector<1x8x128xf32> to vector<8x128xf32>
    %42 = arith.addf %41, %39 : vector<8x128xf32>
    %c0_20 = arith.constant 0 : index
    %c0_21 = arith.constant 0 : index
    %c0_22 = arith.constant 0 : index
    %43 = vector.load %arg6[%c0_20, %c0_21, %c0_22] : memref<1x8x128xf32, #tpu.memory_space<vmem>>, vector<1x8x128xf32>
    %44 = vector.shape_cast %43 : vector<1x8x128xf32> to vector<8x128xf32>
    %45 = vector.shape_cast %42 : vector<8x128xf32> to vector<1x8x128xf32>
    tpu.vector_store %arg6[%c0_20, %c0_21, %c0_22], %45 {strides = array<i32>} : memref<1x8x128xf32, #tpu.memory_space<vmem>>, vector<1x8x128xf32>,
    return
  }
  func.func @transform_0(%arg0: i32, %arg1: i32, %arg2: i32) -> (i32, i32, i32, i32) {
    %c0_i32 = arith.constant 0 : i32
    %c0_i32_0 = arith.constant 0 : i32
    %c0_i32_1 = arith.constant 0 : i32
    return %arg0, %c0_i32, %arg1, %c0_i32_0 : i32, i32, i32, i32
  }
  func.func @transform_1(%arg0: i32, %arg1: i32, %arg2: i32) -> (i32, i32, i32, i32) {
    %c0_i32 = arith.constant 0 : i32
    %c0_i32_0 = arith.constant 0 : i32
    %c0_i32_1 = arith.constant 0 : i32
    return %arg0, %c0_i32, %arg2, %c0_i32_0 : i32, i32, i32, i32
  }
  func.func @transform_2(%arg0: i32, %arg1: i32, %arg2: i32) -> (i32, i32, i32, i32) {
    %c0_i32 = arith.constant 0 : i32
    %c0_i32_0 = arith.constant 0 : i32
    %c0_i32_1 = arith.constant 0 : i32
    return %arg0, %c0_i32, %arg2, %c0_i32_0 : i32, i32, i32, i32
  }
  func.func @transform_3(%arg0: i32, %arg1: i32, %arg2: i32) -> (i32, i32, i32) {
    %c0_i32 = arith.constant 0 : i32
    %c0_i32_0 = arith.constant 0 : i32
    return %arg0, %arg1, %c0_i32 : i32, i32, i32
  }
}

</mosaic_0001>

<bundles_post_ra>
// kernel: tpu_custom_call.1
= control target key start
LH: loop header
LB: loop body
LE: loop exit
PB: predicated region body
PF: predicated region fallthrough
CT: control target
= control target key end

     0   :  { %s1766_s0 = inlined_call_operand.hbm [shape: f32[2,4,8,32], index: 0, kind: input, shape index: {}]   ;;  %s1767_s1 = inlined_call_operand.hbm [shape: f32[2,4,8,32], index: 1, kind: input, shape index: {}]   ;;  %s1768_s2 = inlined_call_operand.hbm [shape: f32[2,4,8,32], index: 2, kind: input, shape index: {}]   ;;  %s1769_s3 = inlined_call_operand.hbm [shape: f32[2,8,128], index: 3, kind: output, shape index: {}]  }
   0x1   :  { %1775 = sst [smem:[#allocation16_spill]] %s1767_s1 }
   0x2   :  { %8 = vsyncpa [#allocation4], 0 }
   0x3   :  { %10 = vsyncpa [#allocation4 + $0x1], 0 }
   0x4   :  { %11 = vsyncpa [#allocation7], 0 }
   0x5   :  { %13 = vsyncpa [#allocation7 + $0x1], 0 }
   0x6   :  { %14 = vsyncpa [#allocation5], 0 }
   0x7   :  { %16 = vsyncpa [#allocation5 + $0x1], 0  ;;  %s1504_s12 = smov 0   ;;  %s1506_s13 = smov 0  }
   0x8   :  { %s1508_s14 = smov 0   ;;  %s1510_s15 = smov 0  }
   0x9   :  { %s1512_s16 = smov 0   ;;  %s1514_s17 = smov 0  }
   0xa LB: > { %1776 = sst [smem:[#allocation13_spill]] %s1467_s16  ;;  %s1535_s18 = sadd.s32 4294967295, %s1471_s17   ;;  %s1471_s17 = sphi %s1514_s17, %s22_s17   ;;  %s1467_s16 = sphi %s1512_s16, %s1791_s16   ;;  %s1463_s15 = sphi %s1510_s15, %s1790_s15   ;;  %s1459_s14 = sphi %s1508_s14, %s1794_s14   ;;  %s1455_s13 = sphi %s1506_s13, %s1793_s13   ;;  %s1451_s12 = sphi %s1504_s12, %s1792_s12  }
   0xb   : > { %s1122_s19 = sadd.s32 4294967294, %s1471_s17   ;;  %s41_s20 = sadd.s32 1, %s1467_s16 }
   0xc   : > { %s50_s21 = sadd.s32 1, %s1459_s14  ;;  %p43_p0 = scmp.ge.s32.totalorder %s41_s20, 2 }
   0xd   : > { %p57_p1 = scmp.ne.s32.totalorder %s1459_s14, %s1455_s13  ;;  %p58_p2 = scmp.eq.s32.totalorder %s1471_s17, 0 }
   0xe   : > { %p63_p3 = scmp.ne.s32.totalorder %s1455_s13, %s1451_s12  ;;  %s1796_s20 = smov (%p43_p0, %s41_s20), 0 }
   0xf   : > { %1777 = sst [smem:[#allocation14_spill]] %s1796_s20  ;;  %p1547_p4 = por %p58_p2, %p57_p1 }
  0x10   : > { %p64_p5 = scmp.eq.s32.totalorder %s1535_s18, 0  ;;  %s45_s23 = ssub.s32 %s1467_s16, %s1796_s20 }
  0x11   : > { %p145_p6 = scmp.eq.s32.totalorder %s1535_s18, 1  ;;  %p48_p7 = scmp.eq.s32.totalorder %s45_s23, 0 }
  0x12   : > { %p1555_p8 = por %p64_p5, %p63_p3  ;;  %p151_p10 = scmp.eq.s32.totalorder %s1122_s19, 1 }
  0x13   : > { %p1559_p9 = por %p145_p6, %p57_p1  ;;  %p1236_p13 = scmp.lt.s32.totalorder %s1471_s17, 2 }
  0x14   : > { %s1564_s26 = scalar_select %p48_p7, %s1459_s14, %s50_s21  }
  0x15   : > { %p1566_p11 = por %p151_p10, %p63_p3  ;;  %s1770_s28 = sand.u32 1, %s1459_s14  }
  0x16   : > { %1781 = sst [smem:[#allocation15_spill]] %s1564_s26  ;;  %s1575_s29 = sshll.u32 %s1770_s28, 5 }
  0x17   : > { %s1578_s30 = sshll.u32 %s1467_s16, 9  ;;  %p1582_p0 = pnand %p1236_p13, %p1547_p4 }
  0x18   : > { %s193_s5 = sand.u32 1, %s1471_s17   ;;  %s1784_s1 = sld [smem:[#allocation16_spill]] }
  0x19   : > { %s197_s9 = scalar_lea.vmem [#allocation6], %s1575_s29  ;;  %p1134_p1 = scmp.ge.s32.totalorder %s1471_s17, 1 }
  0x1a   : > { %s205_s10 = sshll.u32 %s197_s9, 4  ;;  %p235_p2 = scmp.lt.s32.totalorder %s1471_s17, 3  ;;  %s206_s10 = int_to_ptr.vmem [resolvable:$true] %s205_s10 }
  0x1b   : > { %s1594_s11 = scalar_lea.sflag [#allocation7], %s193_s5  ;;  %p1305_p3 = pneg %p1582_p0 }
  0x1c   : > { %s1316_s19 = scalar_lea.vmem %s206_s10, 512  ;;  %s1473_s21 = smov [#allocation6]  }
  0x1d   : > { %p1317_p4 = scmp.ne.s32.totalorder %s206_s10, %s1316_s19  ;;  %s1321_s22 = sshll.u32 %s1473_s21, 4  ;;  %s1322_s22 = int_to_ptr.vmem [resolvable:$false] %s1321_s22 }
  0x1e   : > { %s204_s8 = scalar_lea.hbm %s1784_s1, %s1578_s30  ;;  %s1323_s23 = scalar_lea.vmem %s1322_s22, 1024 }
  0x1f   : > { %p1319_p5 = pnand %p1317_p4, %p1305_p3  ;;  %p1324_p7 = scmp.lt.s32.totalorder %s206_s10, %s1322_s22 }
  0x20   : > { %p1325_p10 = scmp.lt.s32.totalorder %s1323_s23, %s1316_s19 }
  0x21   : > { %p1320_p6 = pneg %p1319_p5 }
  0x22   : > { %p1326_p13 = por %p1325_p10, %p1324_p7 }
  0x24   : > { %p1327_p12 = pnand %p1326_p13, %p1320_p6 }
  0x26   : > { %1330 = shalt.err (!%p1327_p12)
}
  0x27   : > { %s1773_s6 = smov 128   ;;  %s1475_s5 = smov 8  }
  0x28   : > { %1228 = dma.hbm_to_vmem [thread:$0]  (!%p1582_p0), %s204_s8, 512, %s206_s10, %s1594_s11, %s1773_s6, %s1773_s6, %s1475_s5  }
  0x29   : > { %p1611_p4 = pnand %p1134_p1, %p235_p2  ;;  %s182_s21 = scalar_lea.hbm %s1766_s0, %s1578_s30 }
  0x2a   : > { %s175_s22 = scalar_lea.vmem [#allocation3], %s1575_s29  ;;  %s226_s20 = scalar_lea.hbm %s1768_s2, %s1578_s30 }
  0x2b   : > { %s183_s23 = sshll.u32 %s175_s22, 4  ;;  %s1786_s16 = sand.u32 1, %s1459_s14   ;;  %s184_s23 = int_to_ptr.vmem [resolvable:$true] %s183_s23 }
  0x2c   : > { %s172_s26 = scalar_lea.sflag [#allocation4], %s1786_s16  ;;  %s1344_s8 = scalar_lea.vmem %s184_s23, 512 }
  0x2d   : > { %p1345_p12 = scmp.ne.s32.totalorder %s184_s23, %s1344_s8  ;;  %s1476_s10 = smov [#allocation3]  }
  0x2e   : > { %s1349_s6 = sshll.u32 %s1476_s10, 4  ;;  %s1350_s6 = int_to_ptr.vmem [resolvable:$false] %s1349_s6 }
  0x2f   : > { %p1347_p1 = pnand %p1345_p12, %p1305_p3  ;;  %s1351_s9 = scalar_lea.vmem %s1350_s6, 1024 }
  0x30   : > { %p1352_p5 = scmp.lt.s32.totalorder %s184_s23, %s1350_s6  ;;  %p1353_p6 = scmp.lt.s32.totalorder %s1351_s9, %s1344_s8 }
  0x31   : > { %p1348_p2 = pneg %p1347_p1 }
  0x32   : > { %p1354_p7 = por %p1353_p6, %p1352_p5 }
  0x34   : > { %p1355_p10 = pnand %p1354_p7, %p1348_p2 }
  0x36   : > { %1358 = shalt.err (!%p1355_p10)
}
  0x37   : > { %s1787_s1 = smov 128   ;;  %s219_s16 = scalar_lea.vmem [#allocation8], %s1575_s29 }
  0x38   : > { %1225 = dma.hbm_to_vmem [thread:$0]  (!%p1582_p0), %s182_s21, 512, %s184_s23, %s172_s26, %s1787_s1, %s1787_s1, %s1475_s5  }
  0x39   : > { %s227_s28 = sshll.u32 %s219_s16, 4  ;;  %s1477_s6 = smov [#allocation8]   ;;  %s228_s28 = int_to_ptr.vmem [resolvable:$true] %s227_s28 }
  0x3a   : > { %s1372_s19 = scalar_lea.vmem %s228_s28, 512  ;;  %s1377_s22 = sshll.u32 %s1477_s6, 4  ;;  %s1378_s22 = int_to_ptr.vmem [resolvable:$false] %s1377_s22 }
  0x3b   : > { %p1373_p13 = scmp.ne.s32.totalorder %s228_s28, %s1372_s19  ;;  %s1379_s8 = scalar_lea.vmem %s1378_s22, 1024 }
  0x3c   : > { %p1380_p2 = scmp.lt.s32.totalorder %s228_s28, %s1378_s22  ;;  %p1381_p5 = scmp.lt.s32.totalorder %s1379_s8, %s1372_s19 }
  0x3d   : > { %p1375_p12 = pnand %p1373_p13, %p1305_p3 }
  0x3e   : > { %p1382_p6 = por %p1381_p5, %p1380_p2 }
  0x3f   : > { %p1376_p1 = pneg %p1375_p12 }
  0x41   : > { %p1383_p7 = pnand %p1382_p6, %p1376_p1 }
  0x43   : > { %1386 = shalt.err (!%p1383_p7)
}
  0x44   : > { %1231 = dma.hbm_to_vmem [thread:$0]  (!%p1582_p0), %s226_s20, 512, %s228_s28, %s1594_s11, %s1787_s1, %s1787_s1, %s1475_s5  }
  0x45   : > { %239 = sbr.rel (%p1611_p4) target bundleno = 661 (0x295), region = 32  ;;  %s1652_s21 = sand.u32 (!%p1611_p4), 1, %s1455_s13  }
  0x46   : > { %s1655_s4 = sshll.u32 (!%p1611_p4), %s1652_s21, 5  ;;  %s242_s23 = scalar_lea.sflag (!%p1611_p4), [#allocation4], %s1652_s21 }
  0x47   : > { %s245_s10 = scalar_lea.vmem (!%p1611_p4), [#allocation3], %s1655_s4 }
  0x4a   : > { %1438 = dma.done.wait (%p1555_p8), %s242_s23, 512  }
  0x4b   : > { %1440 = vsyncadd (%p1555_p8), %s242_s23, 4294966784  ;;  %s250_s20 = sand.u32 1, %s1535_s18   ;;  %s254_s11 = scalar_lea.vmem [#allocation6], %s1655_s4 }
  0x4c   : > { %s251_s30 = scalar_lea.sflag [#allocation7], %s250_s20 }
  0x4d   : > { %1442 = dma.done.wait (%p1555_p8), %s251_s30, 1024  }
  0x4e   : > { %1444 = vsyncadd (%p1555_p8), %s251_s30, 4294966272  ;;  %v1478_v0 = vmov 0.0   ;;  %vm1479_vm0 = vmmov 0   ;;  %vm309_vm1 = vcmask 261120   ;;  %v318_v1 = vld [vmem:[%s254_s11] sm:$0xff]  ;;  %v319_v2 = vld [vmem:[%s254_s11 + $0x8] sm:$0xff] }
  0x4f   : > { %1174 = vmatprep.subr.mxu0 %v1478_v0  ;;  %1179 = vmatprep.subr.mxu1 %v1478_v0  ;;  %v301_v3 = vld [vmem:[%s245_s10] sm:$0xff]  ;;  %v302_v5 = vld [vmem:[%s245_s10 + $0x8] sm:$0xff]  ;;  %v303_v7 = vld [vmem:[%s245_s10 + $0x10] sm:$0xff]  ;;  %s1700_s18 = scalar_lea.vmem [#allocation8], %s1655_s4  ;;  %vm631_vm2 = vcmask 64512   ;;  %s1480_s24 = smov 32  }
  0x50   : > { %1176 = vmatprep.mubr.msk.f32.mxu0 %vm1479_vm0, %v1478_v0  ;;  %1181 = vmatprep.mubr.msk.f32.mxu1 %vm1479_vm0, %v1478_v0  ;;  %v305_v4 = vmul.f32 0.17677669, %v301_v3  ;;  %v306_v6 = vmul.f32 0.17677669, %v302_v5  ;;  %v304_v8 = vld [vmem:[%s245_s10 + $0x18] sm:$0xff]  ;;  %v320_v11 = vld [vmem:[%s254_s11 + $0x10] sm:$0xff] }
  0x51   : > { %1175 = vmatpush3.xpose.msk.msra.mxu0 %vm309_vm1, %v318_v1  ;;  %1180 = vmatpush3.xpose.msk.msra.mxu1 %vm309_vm1, %v319_v2  ;;  %v307_v9 = vmul.f32 0.17677669, %v303_v7  ;;  %v308_v10 = vmul.f32 0.17677669, %v304_v8  ;;  %v321_v13 = vld [vmem:[%s254_s11 + $0x18] sm:$0xff]  ;;  %v322_v17 = vld [vmem:[%s1700_s18] sm:$0xff] }
  0x52   : > { %1184 = vmatprep.subr.mxu0 %v1478_v0  ;;  %1189 = vmatprep.subr.mxu1 %v1478_v0  ;;  %310 = vst.msk [vmem:[#allocation2] sm:$0xff] %vm309_vm1, %v305_v4  ;;  %311 = vst.msk [vmem:[#allocation2 + $0x8] sm:$0xff] %vm309_vm1, %v306_v6  ;;  %v323_v18 = vld [vmem:[%s1700_s18 + $0x8] sm:$0xff]  ;;  %v324_v56 = vld [vmem:[%s1700_s18 + $0x10] sm:$0xff]  ;;  %s1481_s5 = smov 96   ;;  %s1482_s7 = smov 64  }
  0x53   : > { %312 = vst.msk [vmem:[#allocation2 + $0x10] sm:$0xff] %vm309_vm1, %v307_v9  ;;  %313 = vst.msk [vmem:[#allocation2 + $0x18] sm:$0xff] %vm309_vm1, %v308_v10  ;;  %v325_v57 = vld [vmem:[%s1700_s18 + $0x18] sm:$0xff]  ;;  %s1138_s9 = sshll.u32 %s1652_s21, 3  ;;  %vm968_vm3 = vcmask 523264   ;;  %vm970_vm4 = vcmask 785408  }
  0x54   : > { %s1152_s1 = sshll.u32 %s1463_s15, 7  ;;  %s295_s16 = scalar_lea.vmem [#allocation9], %s1138_s9 }
  0x55   : > { %s990_s28 = sshll.u32 %s295_s16, 4  ;;  %s988_s22 = scalar_lea.hbm %s1769_s3, %s1152_s1  ;;  %s991_s28 = int_to_ptr.vmem [resolvable:$true] %s990_s28 }
  0x56   : > { %s976_s8 = scalar_lea.sflag [#allocation5], %s1652_s21  ;;  %s1387_s26 = scalar_lea.vmem %s991_s28, 128 }
  0x57   : > { %p1388_p8 = scmp.ne.s32.totalorder %s991_s28, %s1387_s26  ;;  %s1483_s29 = smov [#allocation9]  }
  0x58   : > { %s1391_s4 = sshll.u32 %s1483_s29, 4  ;;  %s1392_s4 = int_to_ptr.vmem [resolvable:$false] %s1391_s4 }
  0x59   : > { %v314_v12 = vld [vmem:[#allocation2] sm:$0xff]  ;;  %v315_v14 = vld [vmem:[#allocation2 + $0x8] sm:$0xff]  ;;  %p1389_p0 = pnand %p1388_p8, %p1559_p9  ;;  %s1393_s15 = scalar_lea.vmem %s1392_s4, 256 }
  0x5a   : > { %1177 = vmatmul.mubr.msk.f32.vlgmr.msra.gmra.mxu0 %vm309_vm1, %v314_v12  ;;  %1182 = vmatmul.mubr.msk.f32.vlgmr.msra.gmra.mxu1 %vm309_vm1, %v315_v14  ;;  %v316_v15 = vld [vmem:[#allocation2 + $0x10] sm:$0xff]  ;;  %v317_v16 = vld [vmem:[#allocation2 + $0x18] sm:$0xff]  ;;  %p1394_p4 = scmp.lt.s32.totalorder %s991_s28, %s1392_s4  ;;  %p1395_p10 = scmp.lt.s32.totalorder %s1393_s15, %s1387_s26 }
  0x5b   : > { %1185 = vmatpush3.xpose.msk.msra.mxu0 %vm309_vm1, %v320_v11  ;;  %1190 = vmatpush3.xpose.msk.msra.mxu1 %vm309_vm1, %v321_v13  ;;  %p1390_p3 = pneg %p1389_p0 }
  0x5c   : > { %1186 = vmatprep.mubr.msk.f32.mxu0 %vm1479_vm0, %v1478_v0  ;;  %1191 = vmatprep.mubr.msk.f32.mxu1 %vm1479_vm0, %v1478_v0  ;;  %p1396_p13 = por %p1395_p10, %p1394_p4 }
  0x5d   : > { %1194 = vmatprep.subr.mxu0 %v1478_v0  ;;  %1199 = vmatprep.subr.mxu1 %v1478_v0 }
  0x5e   : > { %1187 = vmatmul.mubr.msk.f32.vlgmr.msra.gmra.mxu0 %vm309_vm1, %v316_v15  ;;  %1192 = vmatmul.mubr.msk.f32.vlgmr.msra.gmra.mxu1 %vm309_vm1, %v317_v16  ;;  %p1397_p12 = pnand %p1396_p13, %p1390_p3 }
  0x5f   : > { %1196 = vmatprep.mubr.msk.f32.mxu0 %vm1479_vm0, %v1478_v0  ;;  %1201 = vmatprep.mubr.msk.f32.mxu1 %vm1479_vm0, %v1478_v0 }
  0x60   : > { %1195 = vmatpush3.msra.mxu0 %v322_v17  ;;  %1200 = vmatpush3.msra.mxu1 %v323_v18 }
  0x61   : > { %1204 = vmatprep.subr.mxu0 %v1478_v0  ;;  %1209 = vmatprep.subr.mxu1 %v1478_v0 }
 0x11a   : > { %v399_v19 = vpop.f32.mrf.mxu0  ;;  %v475_v20 = vpop.f32.mrf.mxu1 }
 0x11b   : > { %v632_v23 = vsel %vm631_vm2, %v399_v19, -inf  ;;  %v633_v24 = vsel %vm631_vm2, %v475_v20, -inf }
 0x11c   : > { %v1178_v21 = vpop.f32.mrf.mxu0  ;;  %v1183_v22 = vpop.f32.mrf.mxu1  ;;  %v636_v30 = vmax.f32 %v632_v23, %v633_v24 }
 0x11e   : > { %v551_v25 = vpop.f32.mrf.mxu0  ;;  %v627_v27 = vpop.f32.mrf.mxu1 }
 0x11f   : > { %v634_v26 = vsel %vm631_vm2, %v551_v25, -inf  ;;  %v635_v28 = vsel %vm631_vm2, %v627_v27, -inf }
 0x120   : > { %v1188_v29 = vpop.f32.mrf.mxu0  ;;  %v637_v31 = vmax.f32 %v634_v26, %v635_v28  ;;  %v1193_v32 = vpop.f32.mrf.mxu1 }
 0x122   : > { %v638_v33 = vmax.f32 %v636_v30, %v637_v31 }
 0x124   : > { %v639_v34 = vsub.f32 %v399_v19, %v638_v33  ;;  %v640_v35 = vsub.f32 %v475_v20, %v638_v33  ;;  %v641_v36 = vsub.f32 %v551_v25, %v638_v33  ;;  %v642_v37 = vsub.f32 %v627_v27, %v638_v33 }
 0x126   : > { %v643_v38 = vmul.f32 1.442695, %v639_v34  ;;  %v645_v39 = vmul.f32 1.442695, %v640_v35  ;;  %v647_v40 = vmul.f32 1.442695, %v641_v36 }
 0x127   : > { %v649_v41 = vmul.f32 1.442695, %v642_v37 }
 0x128   : > { %1293 = vpow2.f32 %v643_v38 }
 0x129   : > { %1295 = vpow2.f32 %v645_v39 }
 0x12a   : > { %1297 = vpow2.f32 %v647_v40 }
 0x12b   : > { %1299 = vpow2.f32 %v649_v41 }
 0x135   : > { %v1294_v42 = vpop.eup %1293 }
 0x136   : > { %v1296_v43 = vpop.eup %1295  ;;  %v651_v44 = vsel %vm631_vm2, %v1294_v42, 0.0 }
 0x137   : > { %v1298_v45 = vpop.eup %1297  ;;  %v652_v46 = vsel %vm631_vm2, %v1296_v43, 0.0 }
 0x138   : > { %v1300_v47 = vpop.eup %1299  ;;  %v653_v48 = vadd.f32 %v652_v46, %v651_v44  ;;  %v654_v49 = vsel %vm631_vm2, %v1298_v45, 0.0 }
 0x139   : > { %v656_v51 = vsel %vm631_vm2, %v1300_v47, 0.0 }
 0x13a   : > { %v655_v50 = vadd.f32 %v654_v49, %v653_v48 }
 0x13c   : > { %v657_v52 = vadd.f32 %v656_v51, %v655_v50 }
 0x13e   : > { %1301 = vrcp.f32 %v657_v52 }
 0x14b   : > { %v1302_v53 = vpop.eup %1301 }
 0x14c   : > { %v659_v54 = vmul.f32 %v1302_v53, %v1294_v42  ;;  %v660_v55 = vmul.f32 %v1302_v53, %v1296_v43  ;;  %v661_v58 = vmul.f32 %v1302_v53, %v1298_v45  ;;  %v662_v59 = vmul.f32 %v1302_v53, %v1300_v47 }
 0x14e   : > { %1197 = vmatmul.mubr.msk.f32.vlgmr.msra.gmra.mxu0 %vm631_vm2, %v659_v54  ;;  %1202 = vmatmul.mubr.msk.f32.vlgmr.msra.gmra.mxu1 %vm631_vm2, %v660_v55 }
 0x14f   : > { %1205 = vmatpush3.msra.mxu0 %v324_v56  ;;  %1210 = vmatpush3.msra.mxu1 %v325_v57 }
 0x150   : > { %1206 = vmatprep.mubr.msk.f32.mxu0 %vm1479_vm0, %v1478_v0  ;;  %1211 = vmatprep.mubr.msk.f32.mxu1 %vm1479_vm0, %v1478_v0 }
 0x152   : > { %1207 = vmatmul.mubr.msk.f32.vlgmr.msra.gmra.mxu0 %vm631_vm2, %v661_v58  ;;  %1212 = vmatmul.mubr.msk.f32.vlgmr.msra.gmra.mxu1 %vm631_vm2, %v662_v59 }
 0x20e   : > { %v732_v60 = vpop.f32.mrf.mxu0  ;;  %v805_v61 = vpop.f32.mrf.mxu1 }
 0x20f   : > { %956 = vrot.lane.b32.xlu0 %v805_v61, %s1480_s24 }
 0x210   : > { %v1198_v62 = vpop.f32.mrf.mxu0  ;;  %v1203_v63 = vpop.f32.mrf.mxu1 }
 0x212   : > { %v878_v1 = vpop.f32.mrf.mxu0  ;;  %v951_v2 = vpop.f32.mrf.mxu1 }
 0x213   : > { %964 = vrot.lane.b32.xlu1 %v951_v2, %s1481_s5  ;;  %960 = vrot.lane.b32.xlu0 %v878_v1, %s1482_s7 }
 0x214   : > { %v1208_v0 = vpop.f32.mrf.mxu0  ;;  %v1213_v3 = vpop.f32.mrf.mxu1 }
 0x281   : > { %v957_v4 = vpop.permute.xlu0 %956 }
 0x282   : > { %v967_v5 = vsel %vm309_vm1, %v732_v60, %v957_v4 }
 0x285   : > { %v965_v6 = vpop.permute.xlu1 %964  ;;  %v961_v7 = vpop.permute.xlu0 %960 }
 0x286   : > { %v969_v8 = vsel %vm968_vm3, %v967_v5, %v961_v7 }
 0x287   : > { %v971_v9 = vsel %vm970_vm4, %v969_v8, %v965_v6 }
 0x288   : > { %974 = vst [vmem:[%s295_s16] sm:$0xff] %v971_v9 }
 0x289   : > { %1400 = shalt.err (!%p1397_p12)
}
 0x28a   : > { %s1401_s23 = scalar_lea.hbm %s988_s22, 128  ;;  %s1405_s20 = scalar_lea.hbm %s1769_s3, 256 }
 0x28b   : > { %p1402_p1 = scmp.ne.s32.totalorder %s988_s22, %s1401_s23  ;;  %p1406_p6 = scmp.lt.s32.totalorder %s988_s22, %s1769_s3 }
 0x28c   : > { %p1407_p7 = scmp.lt.s32.totalorder %s1405_s20, %s1401_s23 }
 0x28d   : > { %p1403_p2 = pnand %p1402_p1, %p1559_p9 }
 0x28e   : > { %p1408_p8 = por %p1407_p7, %p1406_p6 }
 0x28f   : > { %p1404_p5 = pneg %p1403_p2 }
 0x291   : > { %p1409_p0 = pnand %p1408_p8, %p1404_p5 }
 0x293   : > { %1412 = shalt.err (!%p1409_p0)
}
 0x294   : > { %1220 = dma.vmem_to_hbm [thread:$0]  (%p1559_p9), %s991_s28, 128, %s988_s22, %s976_s8  }
 0x295 PF: > { %s1002_s18 = sand.u32 1, %s1451_s12   ;;  %p1788_p3 = scmp.ge.s32.totalorder %s1471_s17, 2 }
 0x296   : > { %s1003_s24 = scalar_lea.sflag [#allocation5], %s1002_s18 }
 0x297   : > { %p1233_p4 = pnand %p1788_p3, %p1566_p11 }
 0x299   : > { %p1234_p10 = pneg %p1233_p4 }
 0x29b   : > { %1446 = dma.done.wait (%p1234_p10), %s1003_s24, 128  }
 0x29c   : > { %1448 = vsyncadd (%p1234_p10), %s1003_s24, 4294967168  ;;  %s22_s17 = sadd.s32 1, %s1471_s17   ;;  %s1789_s5 = sld [smem:[#allocation15_spill]] }
 0x29d   : > { %p19_p13 = scmp.ge.s32.totalorder %s22_s17, 4   ;;  %s1790_s15 = sld [smem:[#allocation13_spill]] }
 0x29e   : > { %s1791_s16 = sld [smem:[#allocation14_spill]]  ;;  %s1792_s12 = smov %s1455_s13 }
 0x29f   : > { %s1793_s13 = smov %s1459_s14  ;;  %21 = sbr.rel (!%p19_p13) target bundleno = 10 (0xa), region = 105 }
 0x2a2   : > { %s1794_s14 = smov %s1789_s5 }
 0x2a4   :  { %1008 = vsyncpa [#allocation4], 1 }
 0x2a5   :  { %1010 = vsyncpa [#allocation4 + $0x1], 1 }
 0x2a6   :  { %1011 = vsyncpa [#allocation7], 1 }
 0x2a7   :  { %1013 = vsyncpa [#allocation7 + $0x1], 1 }
 0x2a8   :  { %1014 = vsyncpa [#allocation5], 1 }
 0x2a9   :  { %1016 = vsyncpa [#allocation5 + $0x1], 1 }

</bundles_post_ra>
